<compile_context>
chip_gen: v5e
topology: v5e:2x2
jax: 0.10.0
libtpu: 0.0.40
codegen_flags: <defaults>
</compile_context>

<pallas_src>
import functools

import jax
import jax.numpy as jnp
from jax.experimental import pallas as pl
from jax.experimental.pallas import tpu as pltpu


# ----------------------------------------------------------------------------
# Kernels
# ----------------------------------------------------------------------------

def _mlp_kernel_2class(x_ref, w1_ref, b1_ref, w2d_ref, b2d_ref, o_ref):
    """fc1 -> ReLU -> (2-class fc2 + log_softmax) specialized epilogue."""
    # fc1 (bf16 x bf16 -> f32 accumulate on MXU), bias + ReLU on VPU.
    h = jnp.dot(x_ref[...], w1_ref[...], preferred_element_type=jnp.float32)
    h = jnp.maximum(h + b1_ref[...], 0.0)

    # d = logit_1 - logit_0  via a single (H,1) matvec (log_softmax only
    # depends on the difference for 2 classes).
    d = jnp.dot(h, w2d_ref[...], preferred_element_type=jnp.float32) + b2d_ref[...]

    # out0 = -softplus(d), out1 = -softplus(-d), numerically stable, shared exp.
    e = jnp.exp(-jnp.abs(d))
    lp = jnp.log(1.0 + e)
    out0 = -(jnp.maximum(d, 0.0) + lp)     # (bm, 1)
    out1 = -(jnp.maximum(-d, 0.0) + lp)    # (bm, 1)

    col = jax.lax.broadcasted_iota(jnp.int32, o_ref.shape, dimension=1)
    o_ref[...] = jnp.where(col == 0, out0, out1).astype(o_ref.dtype)


def _mlp_kernel_generic(x_ref, w1_ref, b1_ref, w2_ref, b2_ref, o_ref):
    """fc1 -> ReLU -> fc2 -> log_softmax for arbitrary output_dim."""
    h = jnp.dot(x_ref[...], w1_ref[...], preferred_element_type=jnp.float32)
    h = jnp.maximum(h + b1_ref[...], 0.0)
    logits = jnp.dot(h, w2_ref[...], preferred_element_type=jnp.float32) + b2_ref[...]
    m = jnp.max(logits, axis=-1, keepdims=True)
    s = logits - m
    lse = jnp.log(jnp.sum(jnp.exp(s), axis=-1, keepdims=True))
    o_ref[...] = (s - lse).astype(o_ref.dtype)


# ----------------------------------------------------------------------------
# Wrapper
# ----------------------------------------------------------------------------

def _round_up(x, m):
    return ((x + m - 1) // m) * m


def _choose_bm(B, block_b):
    """Pick the batch tile. Multi-tile blocks must be multiples of 8."""
    block_b = max(8, (block_b // 8) * 8)
    if B <= block_b:
        if B >= 2048:
            # Split into >= 2 tiles so both v7x TensorCores get work.
            return _round_up(-(-B // 2), 8)
        return B                      # single full-extent tile (exempt from /8 rule)
    return block_b


@functools.partial(jax.jit, static_argnames=("block_b", "x_dtype"))
def mlp_forward(params, x, *, block_b=4096, x_dtype=jnp.bfloat16):
    """x: (B, input_dim) -> log_softmax(fc2(relu(fc1(x))), dim=1), shape (B, output_dim)."""
    B, D_in = x.shape

    # PyTorch-style (out, in) weights; transposes/casts constant-fold under jit.
    w1 = params["fc1_w"].T.astype(x_dtype)                      # (D_in, H) bf16
    b1 = params["fc1_b"].reshape(1, -1).astype(jnp.float32)     # (1, H)
    w2 = params["fc2_w"].T.astype(jnp.float32)                  # (H, D_out)
    b2 = params["fc2_b"].reshape(1, -1).astype(jnp.float32)     # (1, D_out)
    H, D_out = w2.shape

    x_c = x.astype(x_dtype)
    bm = _choose_bm(B, block_b)
    grid = (pl.cdiv(B, bm),)   # no padding: ragged last block handled by Pallas

    if D_out == 2:
        kernel = _mlp_kernel_2class
        w2d = w2[:, 1:2] - w2[:, 0:1]                           # (H, 1)
        b2d = b2[:, 1:2] - b2[:, 0:1]                           # (1, 1)
        tail_ops = (w2d, b2d)
        tail_specs = [
            pl.BlockSpec((H, 1), lambda i: (0, 0)),
            pl.BlockSpec((1, 1), lambda i: (0, 0)),
        ]
    else:
        kernel = _mlp_kernel_generic
        tail_ops = (w2, b2)
        tail_specs = [
            pl.BlockSpec((H, D_out), lambda i: (0, 0)),
            pl.BlockSpec((1, D_out), lambda i: (0, 0)),
        ]

    return pl.pallas_call(
        kernel,
        out_shape=jax.ShapeDtypeStruct((B, D_out), jnp.float32),
        grid_spec=pltpu.PrefetchScalarGridSpec(
            num_scalar_prefetch=0,
            grid=grid,
            in_specs=[
                pl.BlockSpec((bm, D_in), lambda i: (i, 0)),
                pl.BlockSpec((D_in, H), lambda i: (0, 0)),
                pl.BlockSpec((1, H), lambda i: (0, 0)),
            ] + tail_specs,
            out_specs=pl.BlockSpec((bm, D_out), lambda i: (i, 0)),
        ),
        compiler_params=pltpu.CompilerParams(
            dimension_semantics=("parallel",)),
    )(x_c, w1, b1, *tail_ops)


# ----------------------------------------------------------------------------
# Parameter init (PyTorch nn.Linear-style fan-in uniform), pure-JAX reference
# ----------------------------------------------------------------------------

def init_mlp(key, input_dim=86, hidden=32, output_dim=2):
    k1, k2, k3, k4 = jax.random.split(key, 4)
    s1 = 1.0 / (input_dim ** 0.5)
    s2 = 1.0 / (hidden ** 0.5)
    return {
        "fc1_w": jax.random.uniform(k1, (hidden, input_dim), jnp.float32, -s1, s1),
        "fc1_b": jax.random.uniform(k2, (hidden,), jnp.float32, -s1, s1),
        "fc2_w": jax.random.uniform(k3, (output_dim, hidden), jnp.float32, -s2, s2),
        "fc2_b": jax.random.uniform(k4, (output_dim,), jnp.float32, -s2, s2),
    }


def mlp_ref(params, x):
    h = jax.nn.relu(x @ params["fc1_w"].T + params["fc1_b"])
    logits = h @ params["fc2_w"].T + params["fc2_b"]
    return jax.nn.log_softmax(logits, axis=1)


# ----------------------------------------------------------------------------
# Main
# ----------------------------------------------------------------------------

if __name__ == "__main__":
    key = jax.random.PRNGKey(0)
    kp, kx, kp4 = jax.random.split(key, 3)

    # mlp(input_dim=86, output_dim=2): x is (batch, 86)
    params = init_mlp(kp, input_dim=86, hidden=32, output_dim=2)

    # --- small smoke test: B=8, single full-extent tile, specialized 2-class path ---
    x = jax.random.normal(kx, (8, 86), jnp.float32)
    out = jax.block_until_ready(mlp_forward(params, x))
    assert out.shape == (8, 2), out.shape
    ref = mlp_ref(params, x)
    err = float(jnp.max(jnp.abs(out - ref)))
    if err > 5e-2:   # bf16 inputs with f32 accumulation
        raise SystemExit(f"2-class mismatch vs reference: max abs err = {err}")
    row_sum_err = float(jnp.max(jnp.abs(jnp.sum(jnp.exp(out), axis=1) - 1.0)))
    if row_sum_err > 1e-4:
        raise SystemExit(f"log_softmax rows do not normalize: err = {row_sum_err}")

    # --- ragged multi-tile path (grid > 1, last block partial) ---
    x2 = jax.random.normal(jax.random.fold_in(kx, 1), (37, 86), jnp.float32)
    out2 = jax.block_until_ready(mlp_forward(params, x2, block_b=16))
    err2 = float(jnp.max(jnp.abs(out2 - mlp_ref(params, x2))))
    if err2 > 5e-2:
        raise SystemExit(f"ragged-grid mismatch vs reference: max abs err = {err2}")

    # --- generic output_dim != 2 path ---
    params4 = init_mlp(kp4, input_dim=86, hidden=32, output_dim=4)
    out4 = jax.block_until_ready(mlp_forward(params4, x))
    err4 = float(jnp.max(jnp.abs(out4 - mlp_ref(params4, x))))
    if err4 > 5e-2:
        raise SystemExit(f"generic mismatch vs reference: max abs err = {err4}")

    print("KERNEL_OK")
</pallas_src>

<mosaic_0001>
module attributes {stable_mosaic.version = 11 : i64} {
  func.func @_mlp_kernel_2class(%arg0: i32, %arg1: memref<8x86xbf16, #tpu.memory_space<vmem>>, %arg2: memref<86x32xbf16, #tpu.memory_space<vmem>>, %arg3: memref<1x32xf32, #tpu.memory_space<vmem>>, %arg4: memref<32x1xf32, #tpu.memory_space<vmem>>, %arg5: memref<1x1xf32, #tpu.memory_space<vmem>>, %arg6: memref<8x2xf32, #tpu.memory_space<vmem>>) attributes {dimension_semantics = [#tpu.dimension_semantics<parallel>], iteration_bounds = array<i64: 1>, scalar_prefetch = 0 : i64, scratch_operands = 0 : i64, tpu.core_type = #tpu.core_type<tc>, window_params = [{transform_indices = @transform_0, window_bounds = array<i64: 8, 86>}, {pipeline_mode = #tpu.pipeline_mode<synchronous>, transform_indices = @transform_1, window_bounds = array<i64: 86, 32>}, {pipeline_mode = #tpu.pipeline_mode<synchronous>, transform_indices = @transform_2, window_bounds = array<i64: 1, 32>}, {pipeline_mode = #tpu.pipeline_mode<synchronous>, transform_indices = @transform_3, window_bounds = array<i64: 32, 1>}, {pipeline_mode = #tpu.pipeline_mode<synchronous>, transform_indices = @transform_4, window_bounds = array<i64: 1, 1>}, {transform_indices = @transform_5, window_bounds = array<i64: 8, 2>}]} {
    %c0 = arith.constant 0 : index
    %c0_0 = arith.constant 0 : index
    %0 = vector.load %arg1[%c0, %c0_0] : memref<8x86xbf16, #tpu.memory_space<vmem>>, vector<8x86xbf16>
    %c0_1 = arith.constant 0 : index
    %c0_2 = arith.constant 0 : index
    %1 = vector.load %arg2[%c0_1, %c0_2] : memref<86x32xbf16, #tpu.memory_space<vmem>>, vector<86x32xbf16>
    %cst = arith.constant dense<0.000000e+00> : vector<8x32xf32>
    %2 = tpu.matmul %0, %1, %cst {dimension_numbers = #tpu.dot_dimension_numbers<[1], [0], [0], [1], [0, 0, 1, 1], [], []>} : vector<8x86xbf16>, vector<86x32xbf16>, vector<8x32xf32> -> vector<8x32xf32>
    %c0_3 = arith.constant 0 : index
    %c0_4 = arith.constant 0 : index
    %3 = vector.load %arg3[%c0_3, %c0_4] : memref<1x32xf32, #tpu.memory_space<vmem>>, vector<1x32xf32>
    %4 = vector.broadcast %3 : vector<1x32xf32> to vector<8x32xf32>
    %5 = arith.addf %2, %4 : vector<8x32xf32>
    %cst_5 = arith.constant 0.000000e+00 : f32
    %6 = vector.broadcast %cst_5 : f32 to vector<8x32xf32>
    %7 = arith.maximumf %5, %6 : vector<8x32xf32>
    %c0_6 = arith.constant 0 : index
    %c0_7 = arith.constant 0 : index
    %8 = vector.load %arg4[%c0_6, %c0_7] : memref<32x1xf32, #tpu.memory_space<vmem>>, vector<32x1xf32>
    %cst_8 = arith.constant dense<0.000000e+00> : vector<8x1xf32>
    %9 = tpu.matmul %7, %8, %cst_8 {dimension_numbers = #tpu.dot_dimension_numbers<[1], [0], [0], [1], [0, 0, 1, 1], [], []>} : vector<8x32xf32>, vector<32x1xf32>, vector<8x1xf32> -> vector<8x1xf32>
    %c0_9 = arith.constant 0 : index
    %c0_10 = arith.constant 0 : index
    %10 = vector.load %arg5[%c0_9, %c0_10] : memref<1x1xf32, #tpu.memory_space<vmem>>, vector<1x1xf32>
    %11 = vector.broadcast %10 : vector<1x1xf32> to vector<8x1xf32>
    %12 = arith.addf %9, %11 : vector<8x1xf32>
    %13 = math.absf %12 : vector<8x1xf32>
    %cst_11 = arith.constant 0.000000e+00 : f32
    %14 = vector.broadcast %cst_11 : f32 to vector<8x1xf32>
    %15 = arith.subf %14, %13 : vector<8x1xf32>
    %16 = math.exp %15 : vector<8x1xf32>
    %cst_12 = arith.constant 1.000000e+00 : f32
    %17 = vector.broadcast %cst_12 : f32 to vector<8x1xf32>
    %18 = arith.addf %17, %16 : vector<8x1xf32>
    %19 = math.log %18 : vector<8x1xf32>
    %cst_13 = arith.constant 0.000000e+00 : f32
    %20 = vector.broadcast %cst_13 : f32 to vector<8x1xf32>
    %21 = arith.maximumf %12, %20 : vector<8x1xf32>
    %22 = arith.addf %21, %19 : vector<8x1xf32>
    %cst_14 = arith.constant 0.000000e+00 : f32
    %23 = vector.broadcast %cst_14 : f32 to vector<8x1xf32>
    %24 = arith.subf %23, %22 : vector<8x1xf32>
    %cst_15 = arith.constant 0.000000e+00 : f32
    %25 = vector.broadcast %cst_15 : f32 to vector<8x1xf32>
    %26 = arith.subf %25, %12 : vector<8x1xf32>
    %cst_16 = arith.constant 0.000000e+00 : f32
    %27 = vector.broadcast %cst_16 : f32 to vector<8x1xf32>
    %28 = arith.maximumf %26, %27 : vector<8x1xf32>
    %29 = arith.addf %28, %19 : vector<8x1xf32>
    %cst_17 = arith.constant 0.000000e+00 : f32
    %30 = vector.broadcast %cst_17 : f32 to vector<8x1xf32>
    %31 = arith.subf %30, %29 : vector<8x1xf32>
    %32 = tpu.iota {dimensions = array<i32: 1>} : vector<8x2xi32>
    %c0_i32 = arith.constant 0 : i32
    %33 = vector.broadcast %c0_i32 : i32 to vector<8x2xi32>
    %34 = arith.cmpi eq, %32, %33 : vector<8x2xi32>
    %35 = vector.shape_cast %24 : vector<8x1xf32> to vector<8x1xf32>
    %36 = vector.broadcast %35 : vector<8x1xf32> to vector<8x2xf32>
    %37 = vector.shape_cast %31 : vector<8x1xf32> to vector<8x1xf32>
    %38 = vector.broadcast %37 : vector<8x1xf32> to vector<8x2xf32>
    %39 = arith.select %34, %36, %38 : vector<8x2xi1>, vector<8x2xf32>
    %c0_18 = arith.constant 0 : index
    %c0_19 = arith.constant 0 : index
    %40 = vector.load %arg6[%c0_18, %c0_19] : memref<8x2xf32, #tpu.memory_space<vmem>>, vector<8x2xf32>
    tpu.vector_store %arg6[%c0_18, %c0_19], %39 {strides = array<i32>} : memref<8x2xf32, #tpu.memory_space<vmem>>, vector<8x2xf32>,
    return
  }
  func.func @transform_0(%arg0: i32) -> (i32, i32) {
    %c0_i32 = arith.constant 0 : i32
    %c0_i32_0 = arith.constant 0 : i32
    return %arg0, %c0_i32 : i32, i32
  }
  func.func @transform_1(%arg0: i32) -> (i32, i32) {
    %c0_i32 = arith.constant 0 : i32
    %c0_i32_0 = arith.constant 0 : i32
    %c0_i32_1 = arith.constant 0 : i32
    return %c0_i32, %c0_i32_0 : i32, i32
  }
  func.func @transform_2(%arg0: i32) -> (i32, i32) {
    %c0_i32 = arith.constant 0 : i32
    %c0_i32_0 = arith.constant 0 : i32
    %c0_i32_1 = arith.constant 0 : i32
    return %c0_i32, %c0_i32_0 : i32, i32
  }
  func.func @transform_3(%arg0: i32) -> (i32, i32) {
    %c0_i32 = arith.constant 0 : i32
    %c0_i32_0 = arith.constant 0 : i32
    %c0_i32_1 = arith.constant 0 : i32
    return %c0_i32, %c0_i32_0 : i32, i32
  }
  func.func @transform_4(%arg0: i32) -> (i32, i32) {
    %c0_i32 = arith.constant 0 : i32
    %c0_i32_0 = arith.constant 0 : i32
    %c0_i32_1 = arith.constant 0 : i32
    return %c0_i32, %c0_i32_0 : i32, i32
  }
  func.func @transform_5(%arg0: i32) -> (i32, i32) {
    %c0_i32 = arith.constant 0 : i32
    %c0_i32_0 = arith.constant 0 : i32
    return %arg0, %c0_i32 : i32, i32
  }
}

</mosaic_0001>

<bundles_post_ra>
// kernel: mlp_forward.1
= control target key start
LH: loop header
LB: loop body
LE: loop exit
PB: predicated region body
PF: predicated region fallthrough
CT: control target
= control target key end

     0   :  { %vm76_vm0 = vcmask 1042432   ;;  %vm72_vm1 = vcmask 703488   ;;  %vm102_vm2 = vcmask 261120   ;;  %v195_v20 = vmov 0   ;;  %s268_s1 = inlined_call_operand.vmem [shape: bf16[86,32], index: 1, kind: input, shape index: {}]   ;;  %s269_s3 = inlined_call_operand.vmem [shape: f32[32,1], index: 3, kind: input, shape index: {}]   ;;  %s270_s2 = inlined_call_operand.vmem [shape: f32[1,32], index: 2, kind: input, shape index: {}]   ;;  %s271_s0 = inlined_call_operand.vmem [shape: bf16[8,86], index: 0, kind: input, shape index: {}]   ;;  %s272_s4 = inlined_call_operand.<no memory space> [shape: f32[1,1], index: 4, kind: input, shape index: {}]   ;;  %s273_s5 = inlined_call_operand.vmem [shape: f32[8,2], index: 5, kind: output, shape index: {}]  }
   0x1   :  { %v34_v0 = vld [vmem:[%s268_s1 + $0x28] sm:$0x7]  ;;  %v97_v2 = vld [vmem:[%s269_s3 + $0x18] sm:$0xff]  ;;  %v186_v5 = vld [vmem:[%s268_s1 + $0x20] sm:$0xff]  ;;  %v10_v14 = vstv %s272_s4  ;;  %188 = vset.pattern.permute.xlu0 %v195_v20  ;;  %v140_v38 = vlaneseq  ;;  %vm154_vm4 = vcmask 15360  }
   0x2   :  { %v60_v1 = vunpack.c.l.b16 %v34_v0  ;;  %118 = vmatpush.msra.mxu1 %v97_v2  ;;  %v185_v6 = vld [vmem:[%s268_s1 + $0x18] sm:$0xff]  ;;  %v184_v7 = vld [vmem:[%s268_s1 + $0x10] sm:$0xff]  ;;  %v183_v8 = vld [vmem:[%s268_s1 + $0x8] sm:$0xff]  ;;  %11 = vst [vmem:[#allocation2] sm:$0x1] %v10_v14 }
   0x3   :  { %v182_v9 = vld [vmem:[%s268_s1] sm:$0xff]  ;;  %v96_v11 = vld [vmem:[%s269_s3 + $0x10] sm:$0xff]  ;;  %v95_v12 = vld [vmem:[%s269_s3 + $0x8] sm:$0xff]  ;;  %v141_v40 = vand.u32 127, %v140_v38 }
   0x4   :  { %v66_v3 = vpack.c.b16 %v60_v1, %v60_v1  ;;  %v23_v10 = vld [vmem:[%s271_s0] sm:$0xf]  ;;  %119 = vmatpush.msra.mxu1 %v96_v11 }
   0x5   :  { %v94_v13 = vld [vmem:[%s269_s3] sm:$0xff]  ;;  %vm142_vm3 = vcmp.eq.s32.totalorder %v141_v40, 0 }
   0x6   :  { %v78_v4 = vsel %vm76_vm0, %v66_v3, 0  ;;  %120 = vmatpush.msra.mxu1 %v95_v12  ;;  %v189_v15 = vld [vmem:[%s270_s2] ss:$0 sm:$0xff] }
   0x7   :  { %82 = vmatpush.bf16.msra.mxu0 %v78_v4 }
   0x8   :  { %121 = vmatpush.msra.mxu1 %v94_v13 }
   0x9   :  { %v190_v21 = vld [vmem:[#allocation2] ss:$0 sm:$0xff] }
   0xb   :  { %83 = vmatpush.bf16.msra.mxu0 %v186_v5 }
   0xf   :  { %84 = vmatpush.bf16.msra.mxu0 %v185_v6 }
  0x13   :  { %85 = vmatpush.bf16.msra.mxu0 %v184_v7 }
  0x17   :  { %86 = vmatpush.bf16.msra.mxu0 %v183_v8 }
  0x1b   :  { %87 = vmatpush.bf16.msra.mxu0 %v182_v9 }
  0x1e   :  { %180 = vmatmul.msk.bf16.vlgmr.msra.gmra.mxu0 %vm72_vm1, %v23_v10 }
  0x9b   :  { %v89_v16 = vpop.f32.mrf.mxu0 }
  0x9c   :  { %v90_v17 = vadd.f32 %v189_v15, %v89_v16 }
  0x9e   :  { %v93_v18 = vmax.f32 %v90_v17, 0.0 }
  0xa0   :  { %181 = vmatmul.msk.f32.vlgmr.msra.gmra.mxu1 %vm102_vm2, %v93_v18 }
  0xa3   :  { %v91_v19 = vpop.f32.mrf.mxu0 }
 0x11d   :  { %v123_v22 = vpop.f32.mrf.mxu1 }
 0x11e   :  { %v124_v23 = vadd.f32 %v190_v21, %v123_v22 }
 0x120   :  { %v126_v24 = vand.u32 2147483647, %v124_v23  ;;  %v133_v31 = vmax.f32 %v124_v23, 0.0  ;;  %v136_v32 = vsub.f32 0.0, %v124_v23 }
 0x122   :  { %v127_v25 = vsub.f32 0.0, %v126_v24  ;;  %v137_v35 = vmax.f32 %v136_v32, 0.0 }
 0x124   :  { %v128_v26 = vmul.f32 1.442695, %v127_v25 }
 0x126   :  { %191 = vpow2.f32 %v128_v26 }
 0x12c   :  { %v192_v27 = vpop.eup %191 }
 0x12d   :  { %v130_v28 = vadd.f32 1.0, %v192_v27 }
 0x12f   :  { %193 = vlog2.f32 %v130_v28 }
 0x135   :  { %v194_v29 = vpop.eup %193 }
 0x136   :  { %v132_v30 = vmul.f32 0.6931472, %v194_v29 }
 0x138   :  { %v134_v33 = vadd.f32 %v133_v31, %v132_v30  ;;  %v138_v36 = vadd.f32 %v137_v35, %v132_v30 }
 0x13a   :  { %v135_v34 = vsub.f32 0.0, %v134_v33  ;;  %v139_v37 = vsub.f32 0.0, %v138_v36 }
 0x13c   :  { %145 = vperm.xlu0 %188, %v135_v34  }
 0x144   :  { %150 = vperm.xlu0 %188, %v139_v37  }
 0x1ae   :  { %v146_v39 = vpop.permute.xlu0 %145 }
 0x1b6   :  { %v151_v41 = vpop.permute.xlu0 %150 }
 0x1b7   :  { %v153_v42 = vsel %vm142_vm3, %v146_v39, %v151_v41 }
 0x1b8   :  { %155 = vst.msk [vmem:[%s273_s5] sm:$0xff] %vm154_vm4, %v153_v42 }

</bundles_post_ra>
